<compile_context>
chip_gen: v7x
topology: tpu7x:2x2x1
jax: 0.10.0
libtpu: 0.0.40
codegen_flags: <defaults>
</compile_context>

<pallas_src>
import functools
from typing import Any, NamedTuple

import jax
import jax.numpy as jnp
from jax.experimental import pallas as pl
from jax.experimental.pallas import tpu as pltpu


def _cdiv(a, b):
    return -(-a // b)


def _round_up(x, m):
    return _cdiv(x, m) * m


# ----------------------- SVD factorization (setup-time, plain JAX) -----------
def truncated_svd(W, l):
    """W approx Ul @ SV, with Ul: (N, l), SV: (l, M)."""
    U, s, Vh = jnp.linalg.svd(W, full_matrices=False)
    Ul = U[:, :l]
    SV = jnp.diag(s[:l]) @ Vh[:l, :]
    return Ul, SV


class SVDMeta(NamedTuple):
    mode: str            # "fused" (single matmul) or "two_step"
    M: int               # input features
    l: int               # retained rank
    N: int               # output features
    Lp: int              # 128-padded rank
    Np: int              # 128-padded output features
    compute_dtype: str   # MXU input dtype name ("bfloat16" recommended)


def prepare_svd_params(sv_w, sv_b, u_w, u_b, compute_dtype=jnp.bfloat16,
                       force_mode=None):
    """One-time (static) weight prep.

    sv_w: (l, M) = diag(s_l) @ V_l  (fc_sv.weight);  u_w: (N, l) = U_l.
    Two layouts:
      * "fused":    Wc = SV^T @ U^T (M, Np), bc = b_sv @ U^T + b_u (1, Np)
                    -> a single x @ Wc + bc matmul.  Chosen when 128-padding
                    the rank erases the SVD FLOP savings.
      * "two_step": SV^T (M, Lp), U^T (Lp, Np) pre-transposed and zero-padded
                    -> two plain A@B matmuls (low rank actually saves work).
    Zero padding is exact; the unpadded output slice equals the reference.
    """
    l, M = sv_w.shape
    N, _ = u_w.shape
    Lp, Np = _round_up(l, 128), _round_up(N, 128)

    # Padded MXU work per batch row: fused M*Np vs two-step M*Lp + Lp*Np.
    mode = "fused" if M * Np <= M * Lp + Lp * Np else "two_step"
    if force_mode is not None:
        assert force_mode in ("fused", "two_step")
        mode = force_mode

    svt = sv_w.T.astype(jnp.float32)        # (M, l)
    ut = u_w.T.astype(jnp.float32)          # (l, N)
    bsv = sv_b.astype(jnp.float32)
    bu = u_b.astype(jnp.float32)
    cdt = jnp.dtype(compute_dtype)

    if mode == "fused":
        wc = svt @ ut                        # (M, N), folded in f32
        bc = bsv @ ut + bu                   # (N,)
        wc_p = jnp.zeros((M, Np), cdt).at[:, :N].set(wc.astype(cdt))
        bc_p = jnp.zeros((1, Np), jnp.float32).at[0, :N].set(bc)
        arrays = (wc_p, bc_p)
    else:
        svt_p = jnp.zeros((M, Lp), cdt).at[:, :l].set(svt.astype(cdt))
        ut_p = jnp.zeros((Lp, Np), cdt).at[:l, :N].set(ut.astype(cdt))
        bsv_p = jnp.zeros((1, Lp), jnp.float32).at[0, :l].set(bsv)
        bu_p = jnp.zeros((1, Np), jnp.float32).at[0, :N].set(bu)
        arrays = (svt_p, bsv_p, ut_p, bu_p)

    meta = SVDMeta(mode, M, l, N, Lp, Np, cdt.name)
    return arrays, meta


# ------------------------------ Pallas kernels --------------------------------
def _fused_kernel(x_ref, w_ref, b_ref, o_ref):
    # y = x @ Wc + bc  -- single MXU matmul, f32 accumulation, lane-dense store.
    y = jnp.dot(x_ref[...], w_ref[...], preferred_element_type=jnp.float32)
    o_ref[...] = (y + b_ref[...]).astype(o_ref.dtype)


def _two_step_kernel(x_ref, svt_ref, bsv_ref, ut_ref, bu_ref, o_ref, h_ref):
    # h = x @ SV^T + b_sv  -- computed once per batch tile (first N tile) and
    # kept in an f32 VMEM scratch while U^T is streamed in N-column blocks.
    @pl.when(pl.program_id(1) == 0)
    def _():
        h = jnp.dot(x_ref[...], svt_ref[...],
                    preferred_element_type=jnp.float32)
        h_ref[...] = h + bsv_ref[...]

    # y = h @ U^T + b_u  -- second MXU matmul on the current N tile.
    y = jnp.dot(h_ref[...].astype(ut_ref.dtype), ut_ref[...],
                preferred_element_type=jnp.float32)
    o_ref[...] = (y + bu_ref[...]).astype(o_ref.dtype)


def _resident_spec(shape, use_buffered):
    # Grid-invariant operand: one VMEM buffer (no pointless double-buffering).
    index_map = lambda i, j: (0, 0)
    if use_buffered:
        return pl.BlockSpec(shape, index_map,
                            pipeline_mode=pl.Buffered(buffer_count=1))
    return pl.BlockSpec(shape, index_map)


@functools.partial(jax.jit, static_argnames=("meta", "max_tb", "use_buffered"))
def _forward_impl(x, arrays, meta, max_tb, use_buffered):
    B, M = x.shape
    assert M == meta.M, f"expected {meta.M} input features, got {M}"
    cdt = jnp.dtype(meta.compute_dtype)
    out_dtype = x.dtype
    Lp, Np = meta.Lp, meta.Np
    x_ds = cdt.itemsize
    w_ds = cdt.itemsize
    o_ds = jnp.dtype(out_dtype).itemsize
    wbuf = 1 if use_buffered else 2

    # ---- batch tiling: balanced (minimal padding), >=2 steps for megacore ----
    n_i = max(2 if B >= 16 else 1, _cdiv(B, max_tb))
    tb = _round_up(_cdiv(B, n_i), 8)
    Bp = _round_up(B, tb)
    n_i = Bp // tb

    # ---- N tiling: keep the VMEM working set under a v7x-safe budget --------
    def footprint(tn):
        stream = 2 * (tb * M * x_ds + tb * tn * o_ds) + 2 * tn * 4
        if meta.mode == "fused":
            w_res = M * tn * w_ds * (wbuf if tn == Np else 2)
            return stream + w_res
        w_res = (M * Lp * w_ds + Lp * 4) * wbuf
        return stream + w_res + 2 * Lp * tn * w_ds + tb * Lp * 4

    budget = 44 * 1024 * 1024              # headroom under v7x's 64 MiB VMEM
    q = Np // 128
    tn = 128
    for d in range(q, 0, -1):              # largest 128-multiple dividing Np
        if q % d == 0 and footprint(d * 128) <= budget:
            tn = d * 128
            break
    n_j = Np // tn

    vmem_limit = int(min(128 * 1024 * 1024,
                         max(32 * 1024 * 1024,
                             footprint(tn) + 4 * 1024 * 1024)))

    # ---- input: cast to MXU dtype in the wrapper; pad batch rows only if
    #      needed.  The feature dim M is NOT padded (full-extent blocks). -----
    if Bp == B:
        x_c = x.astype(cdt)
    else:
        x_c = jnp.zeros((Bp, M), cdt).at[:B].set(x.astype(cdt))

    grid = (n_i, n_j)
    out_shape = jax.ShapeDtypeStruct((Bp, Np), out_dtype)
    out_spec = pl.BlockSpec((tb, tn), lambda i, j: (i, j))   # lane-dense store
    x_spec = pl.BlockSpec((tb, M), lambda i, j: (i, 0))

    if meta.mode == "fused":
        wc, bc = arrays
        if n_j == 1:
            w_spec = _resident_spec((M, Np), use_buffered)
            b_spec = _resident_spec((1, Np), use_buffered)
        else:
            w_spec = pl.BlockSpec((M, tn), lambda i, j: (0, j))
            b_spec = pl.BlockSpec((1, tn), lambda i, j: (0, j))
        flops = int(2 * Bp * M * Np + Bp * Np)
        bytes_acc = int(Bp * M * x_ds + M * Np * w_ds + Bp * Np * o_ds)
        out = pl.pallas_call(
            _fused_kernel,
            out_shape=out_shape,
            grid=grid,
            in_specs=[x_spec, w_spec, b_spec],
            out_specs=out_spec,
            compiler_params=pltpu.CompilerParams(
                dimension_semantics=("parallel", "parallel"),
                vmem_limit_bytes=vmem_limit),
            cost_estimate=pl.CostEstimate(
                flops=flops, transcendentals=0, bytes_accessed=bytes_acc),
        )(x_c, wc, bc)
    else:
        svt, bsv, ut, bu = arrays
        svt_spec = _resident_spec((M, Lp), use_buffered)
        bsv_spec = _resident_spec((1, Lp), use_buffered)
        if n_j == 1:
            ut_spec = _resident_spec((Lp, Np), use_buffered)
            bu_spec = _resident_spec((1, Np), use_buffered)
        else:
            ut_spec = pl.BlockSpec((Lp, tn), lambda i, j: (0, j))
            bu_spec = pl.BlockSpec((1, tn), lambda i, j: (0, j))
        flops = int(2 * Bp * (M * Lp + Lp * Np) + Bp * (Lp + Np))
        bytes_acc = int(Bp * M * x_ds + (M * Lp + Lp * Np) * w_ds
                        + Bp * Np * o_ds)
        out = pl.pallas_call(
            _two_step_kernel,
            out_shape=out_shape,
            grid=grid,
            in_specs=[x_spec, svt_spec, bsv_spec, ut_spec, bu_spec],
            out_specs=out_spec,
            scratch_shapes=[pltpu.VMEM((tb, Lp), jnp.float32)],  # f32 h
            compiler_params=pltpu.CompilerParams(
                dimension_semantics=("parallel", "arbitrary"),
                vmem_limit_bytes=vmem_limit),
            cost_estimate=pl.CostEstimate(
                flops=flops, transcendentals=0, bytes_accessed=bytes_acc),
        )(x_c, svt, bsv, ut, bu)

    if Bp == B and Np == meta.N:
        return out                     # no slice copy when already aligned
    return out[:B, :meta.N]


def truncated_svd_forward(x, params, *, max_tb=512):
    """x: (B, M) -> (B, N); equivalent to fc_u(fc_sv(x))."""
    arrays, meta = params
    try:
        return _forward_impl(x, arrays, meta=meta, max_tb=max_tb,
                             use_buffered=True)
    except Exception:
        # Fallback for jax versions without BlockSpec(pipeline_mode=Buffered).
        return _forward_impl(x, arrays, meta=meta, max_tb=max_tb,
                             use_buffered=False)


# ------------------------------------ driver ----------------------------------
if __name__ == "__main__":
    key = jax.random.PRNGKey(0)
    k_w, k_x, k_bsv, k_bu = jax.random.split(key, 4)

    # Replaced GEMM weight: N x M (out_features x in_features).
    N, M = 32, 64
    preserve_ratio = 0.5
    l = int(preserve_ratio * N)          # 16 retained singular values
    B = 16                               # batch -> 2 batch grid steps

    W = jax.random.normal(k_w, (N, M), dtype=jnp.float32)
    U, SV = truncated_svd(W, l)          # U: (N, l), SV: (l, M)

    # PyTorch nn.Linear default bias init: U(-1/sqrt(fan_in), 1/sqrt(fan_in)).
    b_sv = jax.random.uniform(k_bsv, (l,), jnp.float32,
                              -1.0 / jnp.sqrt(jnp.float32(M)),
                              1.0 / jnp.sqrt(jnp.float32(M)))
    b_u = jax.random.uniform(k_bu, (N,), jnp.float32,
                             -1.0 / jnp.sqrt(jnp.float32(l)),
                             1.0 / jnp.sqrt(jnp.float32(l)))

    x = jax.random.normal(k_x, (B, M), dtype=jnp.float32)
    ref = (x @ SV.T + b_sv) @ U.T + b_u          # pure-JAX f32 reference

    # 1) Default / recommended path: bf16 MXU inputs, fused single matmul.
    params_bf16 = prepare_svd_params(SV, b_sv, U, b_u,
                                     compute_dtype=jnp.bfloat16)
    y_bf16 = jax.block_until_ready(truncated_svd_forward(x, params_bf16))
    assert y_bf16.shape == (B, N)
    # Tight check vs. a reference quantized the same way (bf16 in, f32 accum).
    wc_q = (SV.T @ U.T).astype(jnp.bfloat16).astype(jnp.float32)
    x_q = x.astype(jnp.bfloat16).astype(jnp.float32)
    ref_q = x_q @ wc_q + (b_sv @ U.T + b_u)
    assert jnp.allclose(y_bf16, ref_q, rtol=1e-2, atol=1e-2), "bf16 mismatch"
    # Scale-relative sanity check vs. the true f32 reference.
    assert float(jnp.max(jnp.abs(y_bf16 - ref))) <= \
        2e-2 * float(jnp.max(jnp.abs(ref))), "bf16 accuracy out of budget"

    # 2) f32 compute path (tight tolerance); B=13 exercises batch padding.
    params_f32 = prepare_svd_params(SV, b_sv, U, b_u,
                                    compute_dtype=jnp.float32)
    y_f32 = jax.block_until_ready(truncated_svd_forward(x[:13], params_f32))
    assert y_f32.shape == (13, N)
    assert jnp.allclose(y_f32, ref[:13], rtol=1e-3, atol=1e-3), "f32 mismatch"

    # 3) Forced two-matmul layout (used when the low rank saves MXU work).
    params_two = prepare_svd_params(SV, b_sv, U, b_u,
                                    compute_dtype=jnp.float32,
                                    force_mode="two_step")
    y_two = jax.block_until_ready(truncated_svd_forward(x, params_two))
    assert jnp.allclose(y_two, ref, rtol=1e-3, atol=1e-3), "two-step mismatch"

    print("KERNEL_OK")
</pallas_src>

<mosaic_0001>
module attributes {stable_mosaic.version = 11 : i64} {
  func.func @_fused_kernel(%arg0: i32, %arg1: i32, %arg2: memref<8x64xbf16, #tpu.memory_space<vmem>>, %arg3: memref<64x128xbf16, #tpu.memory_space<vmem>>, %arg4: memref<1x128xf32, #tpu.memory_space<vmem>>, %arg5: memref<8x128xf32, #tpu.memory_space<vmem>>) attributes {dimension_semantics = [#tpu.dimension_semantics<parallel>, #tpu.dimension_semantics<parallel>], iteration_bounds = array<i64: 2, 1>, scalar_prefetch = 0 : i64, scratch_operands = 0 : i64, tpu.core_type = #tpu.core_type<tc>, window_params = [{transform_indices = @transform_0, window_bounds = array<i64: 8, 64>}, {pipeline_mode = #tpu.pipeline_mode<synchronous>, transform_indices = @transform_1, window_bounds = array<i64: 64, 128>}, {pipeline_mode = #tpu.pipeline_mode<synchronous>, transform_indices = @transform_2, window_bounds = array<i64: 1, 128>}, {transform_indices = @transform_3, window_bounds = array<i64: 8, 128>}]} {
    %c0 = arith.constant 0 : index
    %c0_0 = arith.constant 0 : index
    %0 = vector.load %arg2[%c0, %c0_0] : memref<8x64xbf16, #tpu.memory_space<vmem>>, vector<8x64xbf16>
    %c0_1 = arith.constant 0 : index
    %c0_2 = arith.constant 0 : index
    %1 = vector.load %arg3[%c0_1, %c0_2] : memref<64x128xbf16, #tpu.memory_space<vmem>>, vector<64x128xbf16>
    %cst = arith.constant dense<0.000000e+00> : vector<8x128xf32>
    %2 = tpu.matmul %0, %1, %cst {dimension_numbers = #tpu.dot_dimension_numbers<[1], [0], [0], [1], [0, 0, 1, 1], [], []>} : vector<8x64xbf16>, vector<64x128xbf16>, vector<8x128xf32> -> vector<8x128xf32>
    %c0_3 = arith.constant 0 : index
    %c0_4 = arith.constant 0 : index
    %3 = vector.load %arg4[%c0_3, %c0_4] : memref<1x128xf32, #tpu.memory_space<vmem>>, vector<1x128xf32>
    %4 = vector.broadcast %3 : vector<1x128xf32> to vector<8x128xf32>
    %5 = arith.addf %2, %4 : vector<8x128xf32>
    %c0_5 = arith.constant 0 : index
    %c0_6 = arith.constant 0 : index
    %6 = vector.load %arg5[%c0_5, %c0_6] : memref<8x128xf32, #tpu.memory_space<vmem>>, vector<8x128xf32>
    tpu.vector_store %arg5[%c0_5, %c0_6], %5 {strides = array<i32>} : memref<8x128xf32, #tpu.memory_space<vmem>>, vector<8x128xf32>,
    return
  }
  func.func @transform_0(%arg0: i32, %arg1: i32) -> (i32, i32) {
    %c0_i32 = arith.constant 0 : i32
    %c0_i32_0 = arith.constant 0 : i32
    return %arg0, %c0_i32 : i32, i32
  }
  func.func @transform_1(%arg0: i32, %arg1: i32) -> (i32, i32) {
    %c0_i32 = arith.constant 0 : i32
    %c0_i32_0 = arith.constant 0 : i32
    %c0_i32_1 = arith.constant 0 : i32
    return %c0_i32, %c0_i32_0 : i32, i32
  }
  func.func @transform_2(%arg0: i32, %arg1: i32) -> (i32, i32) {
    %c0_i32 = arith.constant 0 : i32
    %c0_i32_0 = arith.constant 0 : i32
    %c0_i32_1 = arith.constant 0 : i32
    return %c0_i32, %c0_i32_0 : i32, i32
  }
  func.func @transform_3(%arg0: i32, %arg1: i32) -> (i32, i32) {
    %c0_i32 = arith.constant 0 : i32
    return %arg0, %arg1 : i32, i32
  }
}

module attributes {stable_mosaic.version = 11 : i64} {
  func.func @_fused_kernel(%arg0: i32, %arg1: i32, %arg2: memref<8x64xbf16, #tpu.memory_space<vmem>>, %arg3: memref<64x128xbf16, #tpu.memory_space<vmem>>, %arg4: memref<1x128xf32, #tpu.memory_space<vmem>>, %arg5: memref<8x128xf32, #tpu.memory_space<vmem>>) attributes {dimension_semantics = [#tpu.dimension_semantics<parallel>, #tpu.dimension_semantics<parallel>], iteration_bounds = array<i64: 2, 1>, scalar_prefetch = 0 : i64, scratch_operands = 0 : i64, tpu.core_type = #tpu.core_type<tc>, window_params = [{transform_indices = @transform_0, window_bounds = array<i64: 8, 64>}, {pipeline_mode = #tpu.pipeline_mode<synchronous>, transform_indices = @transform_1, window_bounds = array<i64: 64, 128>}, {pipeline_mode = #tpu.pipeline_mode<synchronous>, transform_indices = @transform_2, window_bounds = array<i64: 1, 128>}, {transform_indices = @transform_3, window_bounds = array<i64: 8, 128>}]} {
    %c0 = arith.constant 0 : index
    %c0_0 = arith.constant 0 : index
    %0 = vector.load %arg2[%c0, %c0_0] : memref<8x64xbf16, #tpu.memory_space<vmem>>, vector<8x64xbf16>
    %c0_1 = arith.constant 0 : index
    %c0_2 = arith.constant 0 : index
    %1 = vector.load %arg3[%c0_1, %c0_2] : memref<64x128xbf16, #tpu.memory_space<vmem>>, vector<64x128xbf16>
    %cst = arith.constant dense<0.000000e+00> : vector<8x128xf32>
    %2 = tpu.matmul %0, %1, %cst {dimension_numbers = #tpu.dot_dimension_numbers<[1], [0], [0], [1], [0, 0, 1, 1], [], []>} : vector<8x64xbf16>, vector<64x128xbf16>, vector<8x128xf32> -> vector<8x128xf32>
    %c0_3 = arith.constant 0 : index
    %c0_4 = arith.constant 0 : index
    %3 = vector.load %arg4[%c0_3, %c0_4] : memref<1x128xf32, #tpu.memory_space<vmem>>, vector<1x128xf32>
    %4 = vector.broadcast %3 : vector<1x128xf32> to vector<8x128xf32>
    %5 = arith.addf %2, %4 : vector<8x128xf32>
    %c0_5 = arith.constant 0 : index
    %c0_6 = arith.constant 0 : index
    %6 = vector.load %arg5[%c0_5, %c0_6] : memref<8x128xf32, #tpu.memory_space<vmem>>, vector<8x128xf32>
    tpu.vector_store %arg5[%c0_5, %c0_6], %5 {strides = array<i32>} : memref<8x128xf32, #tpu.memory_space<vmem>>, vector<8x128xf32>,
    return
  }
  func.func @transform_0(%arg0: i32, %arg1: i32) -> (i32, i32) {
    %c0_i32 = arith.constant 0 : i32
    %c0_i32_0 = arith.constant 0 : i32
    return %arg0, %c0_i32 : i32, i32
  }
  func.func @transform_1(%arg0: i32, %arg1: i32) -> (i32, i32) {
    %c0_i32 = arith.constant 0 : i32
    %c0_i32_0 = arith.constant 0 : i32
    %c0_i32_1 = arith.constant 0 : i32
    return %c0_i32, %c0_i32_0 : i32, i32
  }
  func.func @transform_2(%arg0: i32, %arg1: i32) -> (i32, i32) {
    %c0_i32 = arith.constant 0 : i32
    %c0_i32_0 = arith.constant 0 : i32
    %c0_i32_1 = arith.constant 0 : i32
    return %c0_i32, %c0_i32_0 : i32, i32
  }
  func.func @transform_3(%arg0: i32, %arg1: i32) -> (i32, i32) {
    %c0_i32 = arith.constant 0 : i32
    return %arg0, %arg1 : i32, i32
  }
}

</mosaic_0001>

<bundles_post_ra>
// kernel: _forward_impl.1
= control target key start
LH: loop header
LB: loop body
LE: loop exit
PB: predicated region body
PF: predicated region fallthrough
CT: control target
= control target key end

     0   :  { %8 = vsyncpa [#allocation3], 0  ;;  %s777_s0 = inlined_call_operand.vmem [shape: bf16[16,64], index: 0, kind: input, shape index: {}]   ;;  %s778_s1 = inlined_call_operand.hbm [shape: bf16[64,128], index: 1, kind: input, shape index: {}]   ;;  %s779_s2 = inlined_call_operand.vmem [shape: f32[1,128], index: 2, kind: input, shape index: {}]   ;;  %s780_s3 = inlined_call_operand.hbm [shape: f32[16,128], index: 3, kind: output, shape index: {}]  }
   0x1   :  { %9 = vsyncpa [#allocation4], 0 }
   0x2   :  { %11 = vsyncpa [#allocation4 + $0x1], 0  ;;  %s624_s12 = smov 0   ;;  %s626_s13 = smov 0  }
   0x3   :  { %s628_s14 = smov 0   ;;  %s630_s15 = smov 0  }
   0x4   :  { %s632_s16 = smov 0   ;;  %s634_s17 = smov 0  }
   0x5 LB: > { %s376_s18 = sadd.s32 4294967295, %s596_s17   ;;  %s377_s19 = sadd.s32 4294967294, %s596_s17   ;;  %s596_s17 = sphi %s634_s17, %s17_s17   ;;  %s592_s16 = sphi %s632_s16, %s798_s16   ;;  %s588_s15 = sphi %s630_s15, %s797_s15   ;;  %s584_s14 = sphi %s628_s14, %s796_s14   ;;  %s580_s13 = sphi %s626_s13, %s795_s13   ;;  %s576_s12 = sphi %s624_s12, %s794_s12  }
   0x6   : > { %s29_s20 = sadd.s32 1, %s592_s16  ;;  %s106_s21 = sadd.s32 1, %s584_s14 }
   0x7   : > { %p31_p0 = scmp.ge.s32.totalorder %s29_s20, 2  ;;  %p116_p1 = scmp.ne.s32.totalorder %s584_s14, %s580_s13 }
   0x8   : > { %p117_p2 = scmp.eq.s32.totalorder %s376_s18, 1  ;;  %p122_p3 = scmp.ne.s32.totalorder %s580_s13, %s576_s12 }
   0x9   : > { %s800_s20 = smov (%p31_p0, %s29_s20), 0  ;;  %p123_p5 = scmp.eq.s32.totalorder %s377_s19, 1 }
   0xa   : > { %p664_p4 = por %p117_p2, %p116_p1  ;;  %s101_s23 = ssub.s32 %s592_s16, %s800_s20 }
   0xb   : > { %p378_p6 = scmp.ge.s32.totalorder %s596_s17, 1  ;;  %p104_p7 = scmp.eq.s32.totalorder %s101_s23, 0 }
   0xc   : > { %s785_s22 = scalar_select %p664_p4, 1, 0 }
   0xd   : > { %p671_p8 = por %p123_p5, %p122_p3  ;;  %p130_p9 = scmp.lt.s32.totalorder %s596_s17, 3 }
   0xe   : > { %s677_s25 = scalar_select %p104_p7, %s584_s14, %s106_s21  }
   0xf   : > { %s786_s24 = scalar_select %p671_p8, 1, 0 }
  0x10   : > { %p679_p10 = pnand %p378_p6, %p130_p9  ;;  %p683_p11 = scmp.eq.s32.totalorder %s376_s18, 0 }
  0x11   : > { %s598_s28 = smov [#allocation2]   ;;  %s486_s6 = scalar_lea.hbm %s778_s1, 512 }
  0x12   : > { %s787_s26 = scalar_select %p679_p10, 1, 0 }
  0x13   : > { %s788_s27 = scalar_select %p683_p11, 1, 0 }
  0x14   : > { %p418_p12 = pneg %p679_p10  ;;  %s142_s29 = sshll.u32 %s598_s28, 4  ;;  %s143_s29 = int_to_ptr.vmem [resolvable:$true] %s142_s29 }
  0x15   : > { %p487_p0 = scmp.ne.s32.totalorder %s778_s1, %s486_s6  ;;  %p493_p5 = scmp.lt.u32.totalorder %s486_s6, %s778_s1 }
  0x16   : > { %p691_p13 = pnand %p683_p11, %p418_p12 }
  0x18   : > { %p488_p1 = pneg %p691_p13 }
  0x1a   : > { %p489_p2 = pnand %p488_p1, %p487_p0 }
  0x1c   : > { %p490_p3 = pneg %p489_p2 }
  0x1e   : > { %p495_p6 = pnand %p493_p5, %p490_p3 }
  0x20   : > { %498 = shalt.err (!%p495_p6)
}
  0x21   : > { %s499_s11 = scalar_lea.vmem %s143_s29, 512  ;;  %p507_p8 = scmp.lt.s32.totalorder %s143_s29, %s143_s29 }
  0x22   : > { %p500_p7 = scmp.ne.s32.totalorder %s143_s29, %s499_s11  ;;  %p508_p4 = scmp.lt.s32.totalorder %s499_s11, %s499_s11 }
  0x24   : > { %p502_p9 = pnand %p500_p7, %p488_p1  ;;  %p509_p11 = por %p508_p4, %p507_p8 }
  0x26   : > { %p503_p12 = pneg %p502_p9 }
  0x28   : > { %p510_p10 = pnand %p509_p11, %p503_p12 }
  0x2a   : > { %513 = shalt.err (!%p510_p10)
}
  0x2b   : > { %s599_s18 = smov 64   ;;  %s600_s19 = smov 4  }
  0x2c   : > { %421 = dma.hbm_to_vmem [thread:$0]  (!%p691_p13), %s778_s1, 512, %s143_s29, [#allocation3], %s599_s18, %s599_s18, %s600_s19  }
  0x2d   : > { %p790_p0 = scmp.ne.s32.totalorder %s787_s26, 0 }
  0x2e   : > { %p791_p2 = scmp.ne.s32.totalorder (!%p790_p0), %s788_s27, 0 }
  0x2f   : > { %168 = sbr.rel (%p790_p0) target bundleno = 300 (0x12c), region = 32 }
  0x36   : > { %567 = dma.done.wait (%p791_p2), [#allocation3], 512  }
  0x37   : > { %569 = vsyncadd (%p791_p2), [#allocation3], 4294966784  ;;  %v601_v0 = vmov 0.0   ;;  %vm602_vm0 = vmmov 0   ;;  %v482_v1 = vld [vmem:[#allocation2] sm:$0xff]   ;;  %p191_p4 = scmp.lt.s32.totalorder %s588_s15, 1 }
  0x38   : > { %400 = vmatprep.subr.bf16.mxu0 %v601_v0  ;;  %408 = vmatprep.mubr.msk.bf16.mxu0 %vm602_vm0, %v601_v0  ;;  %v483_v2 = vld [vmem:[#allocation2 + $0x8] sm:$0xff]   ;;  %v484_v3 = vld [vmem:[#allocation2 + $0x10] sm:$0xff]   ;;  %v485_v4 = vld [vmem:[#allocation2 + $0x18] sm:$0xff]   ;;  %vm236_vm1 = vcmask 523264   ;;  %s188_s4 = sand.u32 1, %s580_s13   ;;  %s392_s8 = sshll.u32 %s588_s15, 7 }
  0x39   : > { %401 = vmatpush3.bf16.msra.mxu0 %v482_v1  ;;  %s192_s26 = scalar_select %p191_p4, %s588_s15, 1  ;;  %v385_v6 = vld [vmem:[%s779_s2] ss:$0 sm:$0xff] }
  0x3a   : > { %402 = vmatprep.subr.bf16.mxu0 %v601_v0  ;;  %s383_s5 = sshll.u32 %s188_s4, 3  ;;  %s730_s19 = scalar_lea.hbm %s780_s3, %s392_s8 }
  0x3b   : > { %s384_s28 = sshll.u32 %s192_s26, 2  ;;  %s190_s9 = scalar_lea.vmem [#allocation5], %s383_s5 }
  0x3c   : > { %s194_s30 = scalar_lea.vmem %s777_s0, %s384_s28  ;;  %s296_s10 = sshll.u32 %s190_s9, 4  ;;  %s732_s10 = int_to_ptr.vmem [resolvable:$true] %s296_s10 }
  0x3d   : > { %403 = vmatpush3.bf16.msra.mxu0 %v483_v2  ;;  %v196_v5 = vld [vmem:[%s194_s30] sm:$0xf]  ;;  %s282_s21 = scalar_lea.sflag [#allocation4], %s188_s4  ;;  %s514_s15 = scalar_lea.vmem %s732_s10, 128 }
  0x3e   : > { %404 = vmatprep.subr.bf16.mxu0 %v601_v0  ;;  %p515_p8 = scmp.ne.s32.totalorder %s732_s10, %s514_s15  ;;  %p792_p10 = scmp.ne.s32.totalorder %s785_s22, 0 }
  0x3f   : > { %s603_s23 = smov [#allocation5]  }
  0x40   : > { %p516_p11 = pnand %p515_p8, %p792_p10  ;;  %s518_s26 = sshll.u32 %s603_s23, 4  ;;  %s519_s26 = int_to_ptr.vmem [resolvable:$false] %s518_s26 }
  0x41   : > { %405 = vmatpush3.bf16.msra.mxu0 %v484_v3  ;;  %s520_s28 = scalar_lea.vmem %s519_s26, 256  ;;  %p521_p1 = scmp.lt.s32.totalorder %s732_s10, %s519_s26 }
  0x42   : > { %406 = vmatprep.subr.bf16.mxu0 %v601_v0  ;;  %p517_p13 = pneg %p516_p11  ;;  %p522_p3 = scmp.lt.s32.totalorder %s520_s28, %s514_s15 }
  0x44   : > { %p523_p5 = por %p522_p3, %p521_p1 }
  0x45   : > { %407 = vmatpush3.bf16.msra.mxu0 %v485_v4 }
  0x46   : > { %p524_p6 = pnand %p523_p5, %p517_p13 }
  0x48   : > { %409 = vmatmul.mubr.msk.bf16.vlgmr.msra.gmra.mrb[0].mxu0 %vm236_vm1, %v196_v5 }
 0x11b   : > { %v274_v7 = vpop.f32.mrb[0].mxu0 }
 0x11c   : > { %v275_v8 = vadd.f32 %v385_v6, %v274_v7  ;;  %v410_v9 = vpop.f32.mrb[1].mxu0 }
 0x11d   : > { %v277_v10 = vpop.f32.mrb[2].mxu0 }
 0x11e   : > { %280 = vst [vmem:[%s190_s9] sm:$0xff] %v275_v8  ;;  %v411_v11 = vpop.f32.mrb[3].mxu0 }
 0x11f   : > { %527 = shalt.err (!%p524_p6)
}
 0x120   : > { %s528_s27 = scalar_lea.hbm %s730_s19, 128  ;;  %s532_s4 = scalar_lea.hbm %s780_s3, 256 }
 0x121   : > { %p529_p7 = scmp.ne.s32.totalorder %s730_s19, %s528_s27  ;;  %p533_p0 = scmp.lt.u32.totalorder %s730_s19, %s780_s3 }
 0x122   : > { %p534_p2 = scmp.lt.u32.totalorder %s532_s4, %s528_s27  ;;  %p536_p8 = scmp.lt.u32.totalorder %s528_s27, %s730_s19 }
 0x123   : > { %p530_p9 = pnand %p529_p7, %p792_p10 }
 0x124   : > { %p535_p4 = por %p534_p2, %p533_p0 }
 0x125   : > { %p531_p12 = pneg %p530_p9 }
 0x126   : > { %p537_p11 = por %p536_p8, %p535_p4 }
 0x128   : > { %p538_p13 = pnand %p537_p11, %p531_p12 }
 0x12a   : > { %541 = shalt.err (!%p538_p13)
}
 0x12b   : > { %416 = dma.vmem_to_hbm [thread:$0]  (%p792_p10), %s732_s10, 128, %s730_s19, %s282_s21  }
 0x12c PF: > { %p428_p1 = scmp.ge.s32.totalorder %s596_s17, 2  ;;  %s308_s7 = sand.u32 1, %s576_s12  }
 0x12d   : > { %p793_p3 = scmp.ne.s32.totalorder %s786_s24, 0  ;;  %s309_s8 = scalar_lea.sflag [#allocation4], %s308_s7 }
 0x12f   : > { %p423_p5 = pnand %p428_p1, %p793_p3 }
 0x131   : > { %571 = dma.done.wait (!%p423_p5), %s309_s8, 128  }
 0x132   : > { %573 = vsyncadd (!%p423_p5), %s309_s8, 4294967168  ;;  %s17_s17 = sadd.s32 1, %s596_s17   ;;  %s794_s12 = smov %s580_s13 }
 0x133   : > { %p14_p6 = scmp.ge.s32.totalorder %s17_s17, 4   ;;  %s795_s13 = smov %s584_s14 }
 0x134   : > { %s796_s14 = smov %s677_s25  ;;  %s797_s15 = smov %s592_s16 }
 0x135   : > { %s798_s16 = smov %s800_s20  ;;  %16 = sbr.rel (!%p14_p6) target bundleno = 5 (0x5), region = 72 }
 0x13c   :  { %314 = vsyncpa [#allocation3], 1 }
 0x13d   :  { %316 = vsyncpa [#allocation3 + $0x1], 1 }
 0x13e   :  { %317 = vsyncpa [#allocation4], 1 }
 0x13f   :  { %319 = vsyncpa [#allocation4 + $0x1], 1 }

// kernel: _forward_impl.1
= control target key start
LH: loop header
LB: loop body
LE: loop exit
PB: predicated region body
PF: predicated region fallthrough
CT: control target
= control target key end

     0   :  { %8 = vsyncpa [#allocation3], 0  ;;  %s777_s0 = inlined_call_operand.vmem [shape: bf16[16,64], index: 0, kind: input, shape index: {}]   ;;  %s778_s1 = inlined_call_operand.hbm [shape: bf16[64,128], index: 1, kind: input, shape index: {}]   ;;  %s779_s2 = inlined_call_operand.vmem [shape: f32[1,128], index: 2, kind: input, shape index: {}]   ;;  %s780_s3 = inlined_call_operand.hbm [shape: f32[16,128], index: 3, kind: output, shape index: {}]  }
   0x1   :  { %9 = vsyncpa [#allocation4], 0 }
   0x2   :  { %11 = vsyncpa [#allocation4 + $0x1], 0  ;;  %s624_s12 = smov 0   ;;  %s626_s13 = smov 0  }
   0x3   :  { %s628_s14 = smov 0   ;;  %s630_s15 = smov 0  }
   0x4   :  { %s632_s16 = smov 0   ;;  %s634_s17 = smov 0  }
   0x5 LB: > { %s376_s18 = sadd.s32 4294967295, %s596_s17   ;;  %s377_s19 = sadd.s32 4294967294, %s596_s17   ;;  %s596_s17 = sphi %s634_s17, %s17_s17   ;;  %s592_s16 = sphi %s632_s16, %s798_s16   ;;  %s588_s15 = sphi %s630_s15, %s797_s15   ;;  %s584_s14 = sphi %s628_s14, %s796_s14   ;;  %s580_s13 = sphi %s626_s13, %s795_s13   ;;  %s576_s12 = sphi %s624_s12, %s794_s12  }
   0x6   : > { %s29_s20 = sadd.s32 1, %s592_s16  ;;  %s106_s21 = sadd.s32 1, %s584_s14 }
   0x7   : > { %p31_p0 = scmp.ge.s32.totalorder %s29_s20, 2  ;;  %p116_p1 = scmp.ne.s32.totalorder %s584_s14, %s580_s13 }
   0x8   : > { %p117_p2 = scmp.eq.s32.totalorder %s376_s18, 1  ;;  %p122_p3 = scmp.ne.s32.totalorder %s580_s13, %s576_s12 }
   0x9   : > { %s800_s20 = smov (%p31_p0, %s29_s20), 0  ;;  %p123_p5 = scmp.eq.s32.totalorder %s377_s19, 1 }
   0xa   : > { %p664_p4 = por %p117_p2, %p116_p1  ;;  %s101_s23 = ssub.s32 %s592_s16, %s800_s20 }
   0xb   : > { %p378_p6 = scmp.ge.s32.totalorder %s596_s17, 1  ;;  %p104_p7 = scmp.eq.s32.totalorder %s101_s23, 0 }
   0xc   : > { %s785_s22 = scalar_select %p664_p4, 1, 0 }
   0xd   : > { %p671_p8 = por %p123_p5, %p122_p3  ;;  %p130_p9 = scmp.lt.s32.totalorder %s596_s17, 3 }
   0xe   : > { %s677_s25 = scalar_select %p104_p7, %s584_s14, %s106_s21  }
   0xf   : > { %s786_s24 = scalar_select %p671_p8, 1, 0 }
  0x10   : > { %p679_p10 = pnand %p378_p6, %p130_p9  ;;  %p683_p11 = scmp.eq.s32.totalorder %s376_s18, 0 }
  0x11   : > { %s598_s28 = smov [#allocation2]   ;;  %s486_s6 = scalar_lea.hbm %s778_s1, 512 }
  0x12   : > { %s787_s26 = scalar_select %p679_p10, 1, 0 }
  0x13   : > { %s788_s27 = scalar_select %p683_p11, 1, 0 }
  0x14   : > { %p418_p12 = pneg %p679_p10  ;;  %s142_s29 = sshll.u32 %s598_s28, 4  ;;  %s143_s29 = int_to_ptr.vmem [resolvable:$true] %s142_s29 }
  0x15   : > { %p487_p0 = scmp.ne.s32.totalorder %s778_s1, %s486_s6  ;;  %p493_p5 = scmp.lt.u32.totalorder %s486_s6, %s778_s1 }
  0x16   : > { %p691_p13 = pnand %p683_p11, %p418_p12 }
  0x18   : > { %p488_p1 = pneg %p691_p13 }
  0x1a   : > { %p489_p2 = pnand %p488_p1, %p487_p0 }
  0x1c   : > { %p490_p3 = pneg %p489_p2 }
  0x1e   : > { %p495_p6 = pnand %p493_p5, %p490_p3 }
  0x20   : > { %498 = shalt.err (!%p495_p6)
}
  0x21   : > { %s499_s11 = scalar_lea.vmem %s143_s29, 512  ;;  %p507_p8 = scmp.lt.s32.totalorder %s143_s29, %s143_s29 }
  0x22   : > { %p500_p7 = scmp.ne.s32.totalorder %s143_s29, %s499_s11  ;;  %p508_p4 = scmp.lt.s32.totalorder %s499_s11, %s499_s11 }
  0x24   : > { %p502_p9 = pnand %p500_p7, %p488_p1  ;;  %p509_p11 = por %p508_p4, %p507_p8 }
  0x26   : > { %p503_p12 = pneg %p502_p9 }
  0x28   : > { %p510_p10 = pnand %p509_p11, %p503_p12 }
  0x2a   : > { %513 = shalt.err (!%p510_p10)
}
  0x2b   : > { %s599_s18 = smov 64   ;;  %s600_s19 = smov 4  }
  0x2c   : > { %421 = dma.hbm_to_vmem [thread:$0]  (!%p691_p13), %s778_s1, 512, %s143_s29, [#allocation3], %s599_s18, %s599_s18, %s600_s19  }
  0x2d   : > { %p790_p0 = scmp.ne.s32.totalorder %s787_s26, 0 }
  0x2e   : > { %p791_p2 = scmp.ne.s32.totalorder (!%p790_p0), %s788_s27, 0 }
  0x2f   : > { %168 = sbr.rel (%p790_p0) target bundleno = 300 (0x12c), region = 32 }
  0x36   : > { %567 = dma.done.wait (%p791_p2), [#allocation3], 512  }
  0x37   : > { %569 = vsyncadd (%p791_p2), [#allocation3], 4294966784  ;;  %v601_v0 = vmov 0.0   ;;  %vm602_vm0 = vmmov 0   ;;  %v482_v1 = vld [vmem:[#allocation2] sm:$0xff]   ;;  %p191_p4 = scmp.lt.s32.totalorder %s588_s15, 1 }
  0x38   : > { %400 = vmatprep.subr.bf16.mxu0 %v601_v0  ;;  %408 = vmatprep.mubr.msk.bf16.mxu0 %vm602_vm0, %v601_v0  ;;  %v483_v2 = vld [vmem:[#allocation2 + $0x8] sm:$0xff]   ;;  %v484_v3 = vld [vmem:[#allocation2 + $0x10] sm:$0xff]   ;;  %v485_v4 = vld [vmem:[#allocation2 + $0x18] sm:$0xff]   ;;  %vm236_vm1 = vcmask 523264   ;;  %s188_s4 = sand.u32 1, %s580_s13   ;;  %s392_s8 = sshll.u32 %s588_s15, 7 }
  0x39   : > { %401 = vmatpush3.bf16.msra.mxu0 %v482_v1  ;;  %s192_s26 = scalar_select %p191_p4, %s588_s15, 1  ;;  %v385_v6 = vld [vmem:[%s779_s2] ss:$0 sm:$0xff] }
  0x3a   : > { %402 = vmatprep.subr.bf16.mxu0 %v601_v0  ;;  %s383_s5 = sshll.u32 %s188_s4, 3  ;;  %s730_s19 = scalar_lea.hbm %s780_s3, %s392_s8 }
  0x3b   : > { %s384_s28 = sshll.u32 %s192_s26, 2  ;;  %s190_s9 = scalar_lea.vmem [#allocation5], %s383_s5 }
  0x3c   : > { %s194_s30 = scalar_lea.vmem %s777_s0, %s384_s28  ;;  %s296_s10 = sshll.u32 %s190_s9, 4  ;;  %s732_s10 = int_to_ptr.vmem [resolvable:$true] %s296_s10 }
  0x3d   : > { %403 = vmatpush3.bf16.msra.mxu0 %v483_v2  ;;  %v196_v5 = vld [vmem:[%s194_s30] sm:$0xf]  ;;  %s282_s21 = scalar_lea.sflag [#allocation4], %s188_s4  ;;  %s514_s15 = scalar_lea.vmem %s732_s10, 128 }
  0x3e   : > { %404 = vmatprep.subr.bf16.mxu0 %v601_v0  ;;  %p515_p8 = scmp.ne.s32.totalorder %s732_s10, %s514_s15  ;;  %p792_p10 = scmp.ne.s32.totalorder %s785_s22, 0 }
  0x3f   : > { %s603_s23 = smov [#allocation5]  }
  0x40   : > { %p516_p11 = pnand %p515_p8, %p792_p10  ;;  %s518_s26 = sshll.u32 %s603_s23, 4  ;;  %s519_s26 = int_to_ptr.vmem [resolvable:$false] %s518_s26 }
  0x41   : > { %405 = vmatpush3.bf16.msra.mxu0 %v484_v3  ;;  %s520_s28 = scalar_lea.vmem %s519_s26, 256  ;;  %p521_p1 = scmp.lt.s32.totalorder %s732_s10, %s519_s26 }
  0x42   : > { %406 = vmatprep.subr.bf16.mxu0 %v601_v0  ;;  %p517_p13 = pneg %p516_p11  ;;  %p522_p3 = scmp.lt.s32.totalorder %s520_s28, %s514_s15 }
  0x44   : > { %p523_p5 = por %p522_p3, %p521_p1 }
  0x45   : > { %407 = vmatpush3.bf16.msra.mxu0 %v485_v4 }
  0x46   : > { %p524_p6 = pnand %p523_p5, %p517_p13 }
  0x48   : > { %409 = vmatmul.mubr.msk.bf16.vlgmr.msra.gmra.mrb[0].mxu0 %vm236_vm1, %v196_v5 }
 0x11b   : > { %v274_v7 = vpop.f32.mrb[0].mxu0 }
 0x11c   : > { %v275_v8 = vadd.f32 %v385_v6, %v274_v7  ;;  %v410_v9 = vpop.f32.mrb[1].mxu0 }
 0x11d   : > { %v277_v10 = vpop.f32.mrb[2].mxu0 }
 0x11e   : > { %280 = vst [vmem:[%s190_s9] sm:$0xff] %v275_v8  ;;  %v411_v11 = vpop.f32.mrb[3].mxu0 }
 0x11f   : > { %527 = shalt.err (!%p524_p6)
}
 0x120   : > { %s528_s27 = scalar_lea.hbm %s730_s19, 128  ;;  %s532_s4 = scalar_lea.hbm %s780_s3, 256 }
 0x121   : > { %p529_p7 = scmp.ne.s32.totalorder %s730_s19, %s528_s27  ;;  %p533_p0 = scmp.lt.u32.totalorder %s730_s19, %s780_s3 }
 0x122   : > { %p534_p2 = scmp.lt.u32.totalorder %s532_s4, %s528_s27  ;;  %p536_p8 = scmp.lt.u32.totalorder %s528_s27, %s730_s19 }
 0x123   : > { %p530_p9 = pnand %p529_p7, %p792_p10 }
 0x124   : > { %p535_p4 = por %p534_p2, %p533_p0 }
 0x125   : > { %p531_p12 = pneg %p530_p9 }
 0x126   : > { %p537_p11 = por %p536_p8, %p535_p4 }
 0x128   : > { %p538_p13 = pnand %p537_p11, %p531_p12 }
 0x12a   : > { %541 = shalt.err (!%p538_p13)
}
 0x12b   : > { %416 = dma.vmem_to_hbm [thread:$0]  (%p792_p10), %s732_s10, 128, %s730_s19, %s282_s21  }
 0x12c PF: > { %p428_p1 = scmp.ge.s32.totalorder %s596_s17, 2  ;;  %s308_s7 = sand.u32 1, %s576_s12  }
 0x12d   : > { %p793_p3 = scmp.ne.s32.totalorder %s786_s24, 0  ;;  %s309_s8 = scalar_lea.sflag [#allocation4], %s308_s7 }
 0x12f   : > { %p423_p5 = pnand %p428_p1, %p793_p3 }
 0x131   : > { %571 = dma.done.wait (!%p423_p5), %s309_s8, 128  }
 0x132   : > { %573 = vsyncadd (!%p423_p5), %s309_s8, 4294967168  ;;  %s17_s17 = sadd.s32 1, %s596_s17   ;;  %s794_s12 = smov %s580_s13 }
 0x133   : > { %p14_p6 = scmp.ge.s32.totalorder %s17_s17, 4   ;;  %s795_s13 = smov %s584_s14 }
 0x134   : > { %s796_s14 = smov %s677_s25  ;;  %s797_s15 = smov %s592_s16 }
 0x135   : > { %s798_s16 = smov %s800_s20  ;;  %16 = sbr.rel (!%p14_p6) target bundleno = 5 (0x5), region = 72 }
 0x13c   :  { %314 = vsyncpa [#allocation3], 1 }
 0x13d   :  { %316 = vsyncpa [#allocation3 + $0x1], 1 }
 0x13e   :  { %317 = vsyncpa [#allocation4], 1 }
 0x13f   :  { %319 = vsyncpa [#allocation4 + $0x1], 1 }

</bundles_post_ra>
